<compile_context>
chip_gen: v7x
topology: tpu7x:2x2x1
jax: 0.10.0
libtpu: 0.0.40
codegen_flags: <defaults>
</compile_context>

<pallas_src>
import jax
import jax.numpy as jnp
from jax.experimental import pallas as pl
from jax.experimental.pallas import tpu as pltpu

_LANE = 128   # vreg lane width
_SUB = 8      # vreg sublane count (f32)


def _logistic_kernel(x_ref, w_ref, b_ref, o_ref):
    """x_ref: (IN, TBs, 128) VMEM; w_ref: (OUT, IN) SMEM; b_ref: (OUT,) SMEM;
    o_ref: (OUT, TBs, 128) VMEM.

    out[o] = sigmoid(sum_k W[o, k] * x[k] + b[o]) built with scalar-broadcast
    VPU FMAs (MXU not used), EUP exp/reciprocal, and direct per-row stores."""
    out_f = o_ref.shape[0]
    in_f = x_ref.shape[0]
    for o in range(out_f):                         # OUT = 4, unrolled at trace time
        z = w_ref[o, 0] * x_ref[0] + b_ref[o]      # (TBs, 128) broadcast FMA
        for k in range(1, in_f):                   # IN = 2
            z = z + w_ref[o, k] * x_ref[k]
        e = jnp.exp(-z)                            # EUP
        o_ref[o] = pl.reciprocal(1.0 + e, approx=False).astype(o_ref.dtype)


def logistic_reg(x, weight, bias, *, block_chunks=2048):
    """x: (B, IN) f32; weight: (OUT, IN) f32; bias: (OUT,) f32 -> (B, OUT) f32.

    block_chunks = 128-lane column chunks per grid step (multiple of 8).
    Default 2048 chunks = 256K samples/step ~= 12 MiB double-buffered VMEM."""
    B, IN = x.shape
    OUT, IN_w = weight.shape
    assert IN_w == IN and bias.shape == (OUT,)

    n_chunks = pl.cdiv(B, _LANE)
    b_pad = n_chunks * _LANE

    # Pad only to the next multiple of 128 lanes (no full-tile zero fill).
    if b_pad != B:
        x = jnp.pad(x, ((0, b_pad - B), (0, 0)))

    # Feature-major, (8,128)-dense chunk layout.  Layout plumbing for the
    # PyTorch interface; fuse into producer/consumer in a real pipeline.
    x_t = x.T.reshape(IN, n_chunks, _LANE)

    # Grid-step size in chunks.
    tbs = min(block_chunks, n_chunks)
    if tbs == n_chunks and n_chunks >= 2 * _SUB:
        # Whole batch would be one tile: split into >=2 grid steps so v7x can
        # shard the "parallel" axis over both TensorCores (no-op on v5e/v6e).
        half = (n_chunks + 1) // 2
        tbs = -(-half // _SUB) * _SUB
    if tbs < n_chunks:
        tbs = max(_SUB, (tbs // _SUB) * _SUB)      # (8, 128) tiling constraint
    num_tiles = pl.cdiv(n_chunks, tbs)             # trailing block may be ragged

    out_t = pl.pallas_call(
        _logistic_kernel,
        out_shape=jax.ShapeDtypeStruct((OUT, n_chunks, _LANE), x.dtype),
        grid_spec=pltpu.PrefetchScalarGridSpec(
            num_scalar_prefetch=0,
            grid=(num_tiles,),
            in_specs=[
                pl.BlockSpec((IN, tbs, _LANE), lambda i: (0, i, 0)),  # streamed x
                pl.BlockSpec(memory_space=pltpu.MemorySpace.SMEM),    # weight (4,2)
                pl.BlockSpec(memory_space=pltpu.MemorySpace.SMEM),    # bias (4,)
            ],
            out_specs=pl.BlockSpec((OUT, tbs, _LANE), lambda i: (0, i, 0)),
        ),
        compiler_params=pltpu.CompilerParams(
            dimension_semantics=("parallel",),     # shard steps over TCs on v7x
            vmem_limit_bytes=48 * 1024 * 1024,     # headroom on v7x's 64 MiB
        ),
        cost_estimate=pl.CostEstimate(
            flops=2 * OUT * IN * b_pad,
            transcendentals=2 * OUT * b_pad,       # exp + reciprocal per element
            bytes_accessed=4 * ((IN + OUT) * b_pad + OUT * IN + OUT),
        ),
    )(x_t, weight, bias)

    return out_t.reshape(OUT, b_pad)[:, :B].T      # back to PyTorch (B, OUT)


if __name__ == "__main__":
    key = jax.random.PRNGKey(0)
    kx, kw, kb = jax.random.split(key, 3)

    # Deterministic synthetic parameters matching nn.Linear(2, 4).
    batch, in_features, out_features = 8, 2, 4
    x = jax.random.normal(kx, (batch, in_features), dtype=jnp.float32)
    weight = jax.random.normal(kw, (out_features, in_features), dtype=jnp.float32) * 0.5
    bias = jax.random.normal(kb, (out_features,), dtype=jnp.float32) * 0.1

    out = jax.block_until_ready(logistic_reg(x, weight, bias))
    ref = jax.nn.sigmoid(x @ weight.T + bias)
    assert out.shape == (batch, out_features)
    assert jnp.allclose(out, ref, atol=1e-5, rtol=1e-5)

    # Second check: multi-tile grid with a ragged batch and a ragged trailing
    # block (B=2500 -> 20 chunks; block_chunks=8 -> grid steps of 8, 8, 4).
    x2 = jax.random.normal(kx, (2500, in_features), dtype=jnp.float32)
    out2 = jax.block_until_ready(logistic_reg(x2, weight, bias, block_chunks=8))
    ref2 = jax.nn.sigmoid(x2 @ weight.T + bias)
    assert out2.shape == (2500, out_features)
    assert jnp.allclose(out2, ref2, atol=1e-5, rtol=1e-5)

    print("KERNEL_OK")
</pallas_src>

<mosaic_0001>
module attributes {stable_mosaic.version = 11 : i64} {
  func.func @_logistic_kernel(%arg0: i32, %arg1: memref<2x1x128xf32, #tpu.memory_space<vmem>>, %arg2: memref<4x2xf32, #tpu.memory_space<smem>>, %arg3: memref<4xf32, #tpu.memory_space<smem>>, %arg4: memref<4x1x128xf32, #tpu.memory_space<vmem>>) attributes {dimension_semantics = [#tpu.dimension_semantics<parallel>], iteration_bounds = array<i64: 1>, scalar_prefetch = 0 : i64, scratch_operands = 0 : i64, tpu.core_type = #tpu.core_type<tc>, window_params = [{transform_indices = @transform_0, window_bounds = array<i64: 2, 1, 128>}, {transform_indices = @transform_1, window_bounds = array<i64: 4, 2>}, {transform_indices = @transform_2, window_bounds = array<i64: 4>}, {transform_indices = @transform_3, window_bounds = array<i64: 4, 1, 128>}]} {
    %c0 = arith.constant 0 : index
    %c0_0 = arith.constant 0 : index
    %0 = memref.load %arg2[%c0, %c0_0] : memref<4x2xf32, #tpu.memory_space<smem>>
    %c0_1 = arith.constant 0 : index
    %c0_2 = arith.constant 0 : index
    %c0_3 = arith.constant 0 : index
    %1 = vector.load %arg1[%c0_1, %c0_2, %c0_3] : memref<2x1x128xf32, #tpu.memory_space<vmem>>, vector<1x1x128xf32>
    %2 = vector.shape_cast %1 : vector<1x1x128xf32> to vector<1x128xf32>
    %3 = vector.broadcast %0 : f32 to vector<1x128xf32>
    %4 = arith.mulf %3, %2 : vector<1x128xf32>
    %c0_4 = arith.constant 0 : index
    %5 = memref.load %arg3[%c0_4] : memref<4xf32, #tpu.memory_space<smem>>
    %6 = vector.broadcast %5 : f32 to vector<1x128xf32>
    %7 = arith.addf %4, %6 : vector<1x128xf32>
    %c0_5 = arith.constant 0 : index
    %c1 = arith.constant 1 : index
    %8 = memref.load %arg2[%c0_5, %c1] : memref<4x2xf32, #tpu.memory_space<smem>>
    %c1_6 = arith.constant 1 : index
    %c0_7 = arith.constant 0 : index
    %c0_8 = arith.constant 0 : index
    %9 = vector.load %arg1[%c1_6, %c0_7, %c0_8] : memref<2x1x128xf32, #tpu.memory_space<vmem>>, vector<1x1x128xf32>
    %10 = vector.shape_cast %9 : vector<1x1x128xf32> to vector<1x128xf32>
    %11 = vector.broadcast %8 : f32 to vector<1x128xf32>
    %12 = arith.mulf %11, %10 : vector<1x128xf32>
    %13 = arith.addf %7, %12 : vector<1x128xf32>
    %cst = arith.constant 0.000000e+00 : f32
    %14 = vector.broadcast %cst : f32 to vector<1x128xf32>
    %15 = arith.subf %14, %13 : vector<1x128xf32>
    %16 = math.exp %15 : vector<1x128xf32>
    %cst_9 = arith.constant 1.000000e+00 : f32
    %17 = vector.broadcast %cst_9 : f32 to vector<1x128xf32>
    %18 = arith.addf %17, %16 : vector<1x128xf32>
    %19 = tpu.reciprocal %18 : vector<1x128xf32> -> vector<1x128xf32>
    %c0_10 = arith.constant 0 : index
    %c0_11 = arith.constant 0 : index
    %c0_12 = arith.constant 0 : index
    %20 = vector.load %arg4[%c0_10, %c0_11, %c0_12] : memref<4x1x128xf32, #tpu.memory_space<vmem>>, vector<1x1x128xf32>
    %21 = vector.shape_cast %20 : vector<1x1x128xf32> to vector<1x128xf32>
    %22 = vector.shape_cast %19 : vector<1x128xf32> to vector<1x1x128xf32>
    tpu.vector_store %arg4[%c0_10, %c0_11, %c0_12], %22 {strides = array<i32>} : memref<4x1x128xf32, #tpu.memory_space<vmem>>, vector<1x1x128xf32>,
    %c1_13 = arith.constant 1 : index
    %c0_14 = arith.constant 0 : index
    %23 = memref.load %arg2[%c1_13, %c0_14] : memref<4x2xf32, #tpu.memory_space<smem>>
    %c0_15 = arith.constant 0 : index
    %c0_16 = arith.constant 0 : index
    %c0_17 = arith.constant 0 : index
    %24 = vector.load %arg1[%c0_15, %c0_16, %c0_17] : memref<2x1x128xf32, #tpu.memory_space<vmem>>, vector<1x1x128xf32>
    %25 = vector.shape_cast %24 : vector<1x1x128xf32> to vector<1x128xf32>
    %26 = vector.broadcast %23 : f32 to vector<1x128xf32>
    %27 = arith.mulf %26, %25 : vector<1x128xf32>
    %c1_18 = arith.constant 1 : index
    %28 = memref.load %arg3[%c1_18] : memref<4xf32, #tpu.memory_space<smem>>
    %29 = vector.broadcast %28 : f32 to vector<1x128xf32>
    %30 = arith.addf %27, %29 : vector<1x128xf32>
    %c1_19 = arith.constant 1 : index
    %c1_20 = arith.constant 1 : index
    %31 = memref.load %arg2[%c1_19, %c1_20] : memref<4x2xf32, #tpu.memory_space<smem>>
    %c1_21 = arith.constant 1 : index
    %c0_22 = arith.constant 0 : index
    %c0_23 = arith.constant 0 : index
    %32 = vector.load %arg1[%c1_21, %c0_22, %c0_23] : memref<2x1x128xf32, #tpu.memory_space<vmem>>, vector<1x1x128xf32>
    %33 = vector.shape_cast %32 : vector<1x1x128xf32> to vector<1x128xf32>
    %34 = vector.broadcast %31 : f32 to vector<1x128xf32>
    %35 = arith.mulf %34, %33 : vector<1x128xf32>
    %36 = arith.addf %30, %35 : vector<1x128xf32>
    %cst_24 = arith.constant 0.000000e+00 : f32
    %37 = vector.broadcast %cst_24 : f32 to vector<1x128xf32>
    %38 = arith.subf %37, %36 : vector<1x128xf32>
    %39 = math.exp %38 : vector<1x128xf32>
    %cst_25 = arith.constant 1.000000e+00 : f32
    %40 = vector.broadcast %cst_25 : f32 to vector<1x128xf32>
    %41 = arith.addf %40, %39 : vector<1x128xf32>
    %42 = tpu.reciprocal %41 : vector<1x128xf32> -> vector<1x128xf32>
    %c1_26 = arith.constant 1 : index
    %c0_27 = arith.constant 0 : index
    %c0_28 = arith.constant 0 : index
    %43 = vector.load %arg4[%c1_26, %c0_27, %c0_28] : memref<4x1x128xf32, #tpu.memory_space<vmem>>, vector<1x1x128xf32>
    %44 = vector.shape_cast %43 : vector<1x1x128xf32> to vector<1x128xf32>
    %45 = vector.shape_cast %42 : vector<1x128xf32> to vector<1x1x128xf32>
    tpu.vector_store %arg4[%c1_26, %c0_27, %c0_28], %45 {strides = array<i32>} : memref<4x1x128xf32, #tpu.memory_space<vmem>>, vector<1x1x128xf32>,
    %c2 = arith.constant 2 : index
    %c0_29 = arith.constant 0 : index
    %46 = memref.load %arg2[%c2, %c0_29] : memref<4x2xf32, #tpu.memory_space<smem>>
    %c0_30 = arith.constant 0 : index
    %c0_31 = arith.constant 0 : index
    %c0_32 = arith.constant 0 : index
    %47 = vector.load %arg1[%c0_30, %c0_31, %c0_32] : memref<2x1x128xf32, #tpu.memory_space<vmem>>, vector<1x1x128xf32>
    %48 = vector.shape_cast %47 : vector<1x1x128xf32> to vector<1x128xf32>
    %49 = vector.broadcast %46 : f32 to vector<1x128xf32>
    %50 = arith.mulf %49, %48 : vector<1x128xf32>
    %c2_33 = arith.constant 2 : index
    %51 = memref.load %arg3[%c2_33] : memref<4xf32, #tpu.memory_space<smem>>
    %52 = vector.broadcast %51 : f32 to vector<1x128xf32>
    %53 = arith.addf %50, %52 : vector<1x128xf32>
    %c2_34 = arith.constant 2 : index
    %c1_35 = arith.constant 1 : index
    %54 = memref.load %arg2[%c2_34, %c1_35] : memref<4x2xf32, #tpu.memory_space<smem>>
    %c1_36 = arith.constant 1 : index
    %c0_37 = arith.constant 0 : index
    %c0_38 = arith.constant 0 : index
    %55 = vector.load %arg1[%c1_36, %c0_37, %c0_38] : memref<2x1x128xf32, #tpu.memory_space<vmem>>, vector<1x1x128xf32>
    %56 = vector.shape_cast %55 : vector<1x1x128xf32> to vector<1x128xf32>
    %57 = vector.broadcast %54 : f32 to vector<1x128xf32>
    %58 = arith.mulf %57, %56 : vector<1x128xf32>
    %59 = arith.addf %53, %58 : vector<1x128xf32>
    %cst_39 = arith.constant 0.000000e+00 : f32
    %60 = vector.broadcast %cst_39 : f32 to vector<1x128xf32>
    %61 = arith.subf %60, %59 : vector<1x128xf32>
    %62 = math.exp %61 : vector<1x128xf32>
    %cst_40 = arith.constant 1.000000e+00 : f32
    %63 = vector.broadcast %cst_40 : f32 to vector<1x128xf32>
    %64 = arith.addf %63, %62 : vector<1x128xf32>
    %65 = tpu.reciprocal %64 : vector<1x128xf32> -> vector<1x128xf32>
    %c2_41 = arith.constant 2 : index
    %c0_42 = arith.constant 0 : index
    %c0_43 = arith.constant 0 : index
    %66 = vector.load %arg4[%c2_41, %c0_42, %c0_43] : memref<4x1x128xf32, #tpu.memory_space<vmem>>, vector<1x1x128xf32>
    %67 = vector.shape_cast %66 : vector<1x1x128xf32> to vector<1x128xf32>
    %68 = vector.shape_cast %65 : vector<1x128xf32> to vector<1x1x128xf32>
    tpu.vector_store %arg4[%c2_41, %c0_42, %c0_43], %68 {strides = array<i32>} : memref<4x1x128xf32, #tpu.memory_space<vmem>>, vector<1x1x128xf32>,
    %c3 = arith.constant 3 : index
    %c0_44 = arith.constant 0 : index
    %69 = memref.load %arg2[%c3, %c0_44] : memref<4x2xf32, #tpu.memory_space<smem>>
    %c0_45 = arith.constant 0 : index
    %c0_46 = arith.constant 0 : index
    %c0_47 = arith.constant 0 : index
    %70 = vector.load %arg1[%c0_45, %c0_46, %c0_47] : memref<2x1x128xf32, #tpu.memory_space<vmem>>, vector<1x1x128xf32>
    %71 = vector.shape_cast %70 : vector<1x1x128xf32> to vector<1x128xf32>
    %72 = vector.broadcast %69 : f32 to vector<1x128xf32>
    %73 = arith.mulf %72, %71 : vector<1x128xf32>
    %c3_48 = arith.constant 3 : index
    %74 = memref.load %arg3[%c3_48] : memref<4xf32, #tpu.memory_space<smem>>
    %75 = vector.broadcast %74 : f32 to vector<1x128xf32>
    %76 = arith.addf %73, %75 : vector<1x128xf32>
    %c3_49 = arith.constant 3 : index
    %c1_50 = arith.constant 1 : index
    %77 = memref.load %arg2[%c3_49, %c1_50] : memref<4x2xf32, #tpu.memory_space<smem>>
    %c1_51 = arith.constant 1 : index
    %c0_52 = arith.constant 0 : index
    %c0_53 = arith.constant 0 : index
    %78 = vector.load %arg1[%c1_51, %c0_52, %c0_53] : memref<2x1x128xf32, #tpu.memory_space<vmem>>, vector<1x1x128xf32>
    %79 = vector.shape_cast %78 : vector<1x1x128xf32> to vector<1x128xf32>
    %80 = vector.broadcast %77 : f32 to vector<1x128xf32>
    %81 = arith.mulf %80, %79 : vector<1x128xf32>
    %82 = arith.addf %76, %81 : vector<1x128xf32>
    %cst_54 = arith.constant 0.000000e+00 : f32
    %83 = vector.broadcast %cst_54 : f32 to vector<1x128xf32>
    %84 = arith.subf %83, %82 : vector<1x128xf32>
    %85 = math.exp %84 : vector<1x128xf32>
    %cst_55 = arith.constant 1.000000e+00 : f32
    %86 = vector.broadcast %cst_55 : f32 to vector<1x128xf32>
    %87 = arith.addf %86, %85 : vector<1x128xf32>
    %88 = tpu.reciprocal %87 : vector<1x128xf32> -> vector<1x128xf32>
    %c3_56 = arith.constant 3 : index
    %c0_57 = arith.constant 0 : index
    %c0_58 = arith.constant 0 : index
    %89 = vector.load %arg4[%c3_56, %c0_57, %c0_58] : memref<4x1x128xf32, #tpu.memory_space<vmem>>, vector<1x1x128xf32>
    %90 = vector.shape_cast %89 : vector<1x1x128xf32> to vector<1x128xf32>
    %91 = vector.shape_cast %88 : vector<1x128xf32> to vector<1x1x128xf32>
    tpu.vector_store %arg4[%c3_56, %c0_57, %c0_58], %91 {strides = array<i32>} : memref<4x1x128xf32, #tpu.memory_space<vmem>>, vector<1x1x128xf32>,
    return
  }
  func.func @transform_0(%arg0: i32) -> (i32, i32, i32) {
    %c0_i32 = arith.constant 0 : i32
    %c0_i32_0 = arith.constant 0 : i32
    %c0_i32_1 = arith.constant 0 : i32
    return %c0_i32, %arg0, %c0_i32_0 : i32, i32, i32
  }
  func.func @transform_1(%arg0: i32) -> (i32, i32) {
    %c0_i32 = arith.constant 0 : i32
    %c0_i32_0 = arith.constant 0 : i32
    %c0_i32_1 = arith.constant 0 : i32
    return %c0_i32, %c0_i32_0 : i32, i32
  }
  func.func @transform_2(%arg0: i32) -> i32 {
    %c0_i32 = arith.constant 0 : i32
    %c0_i32_0 = arith.constant 0 : i32
    return %c0_i32 : i32
  }
  func.func @transform_3(%arg0: i32) -> (i32, i32, i32) {
    %c0_i32 = arith.constant 0 : i32
    %c0_i32_0 = arith.constant 0 : i32
    %c0_i32_1 = arith.constant 0 : i32
    return %c0_i32, %arg0, %c0_i32_0 : i32, i32, i32
  }
}

</mosaic_0001>

<bundles_post_ra>
// kernel: tpu_custom_call.1
= control target key start
LH: loop header
LB: loop body
LE: loop exit
PB: predicated region body
PF: predicated region fallthrough
CT: control target
= control target key end

     0   :  { %8 = vsyncpa [#allocation4], 0  ;;  %s294_s0 = inlined_call_operand.vmem [shape: f32[2,1,128], index: 0, kind: input, shape index: {}]   ;;  %s295_s1 = inlined_call_operand.vmem [shape: f32[4,2], index: 1, kind: input, shape index: {}]   ;;  %s296_s2 = inlined_call_operand.vmem [shape: f32[4], index: 2, kind: input, shape index: {}]   ;;  %s297_s3 = inlined_call_operand.hbm [shape: f32[4,1,128], index: 3, kind: output, shape index: {}]  }
   0x1   :  { %9 = vsyncpa [#allocation6], 0 }
   0x2   :  { %10 = vsyncpa [#allocation3], 0  ;;  %s19_s14 = sshll.u32 %s295_s1, 4  ;;  %s29_s17 = sshll.u32 %s296_s2, 4  ;;  %s20_s14 = int_to_ptr.vmem [resolvable:$true] %s19_s14  ;;  %s30_s17 = int_to_ptr.vmem [resolvable:$true] %s29_s17 }
   0x3   :  { %s169_s18 = scalar_lea.vmem %s20_s14, 64  ;;  %p174_p1 = scmp.lt.s32.totalorder %s20_s14, %s20_s14 }
   0x4   :  { %p170_p0 = scmp.ne.s32.totalorder %s20_s14, %s169_s18  ;;  %p175_p2 = scmp.lt.s32.totalorder %s169_s18, %s169_s18 }
   0x6   :  { %p176_p3 = por %p175_p2, %p174_p1 }
   0x8   :  { %p177_p4 = pnand %p176_p3, %p170_p0 }
   0xa   :  { %180 = shalt.err (!%p177_p4)
}
   0xb   :  { %s221_s19 = smov [#allocation2]   ;;  %s181_s20 = scalar_lea.vmem %s30_s17, 16 }
   0xc   :  { %22 = dma.vmem_to_smem %s20_s14, 64, %s221_s19, [#allocation4]  }
   0xd   :  { %p182_p5 = scmp.ne.s32.totalorder %s30_s17, %s181_s20  ;;  %p186_p6 = scmp.lt.s32.totalorder %s30_s17, %s30_s17 }
   0xe   :  { %p187_p7 = scmp.lt.s32.totalorder %s181_s20, %s181_s20 }
  0x10   :  { %p188_p8 = por %p187_p7, %p186_p6 }
  0x12   :  { %p189_p9 = pnand %p188_p8, %p182_p5 }
  0x14   :  { %192 = shalt.err (!%p189_p9)
}
  0x15   :  { %s222_s1 = smov [#allocation5]  }
  0x16   :  { %32 = dma.vmem_to_smem %s30_s17, 16, %s222_s1, [#allocation6]  }
  0x17   :  { %215 = dma.done.wait [#allocation4], 64  }
  0x18   :  { %216 = vsyncadd [#allocation4], 4294967232 }
  0x19   :  { %217 = dma.done.wait [#allocation6], 16  }
  0x1a   :  { %218 = vsyncadd [#allocation6], 4294967280 }
  0x1b   :  { %39 = sfence }
  0x1c   :  { %s40_s2 = sld [smem:[#allocation2]]  ;;  %s134_s22 = sld [smem:[#allocation2 + $0x1]]  ;;  %v41_v0 = vld [vmem:[%s294_s0] sm:$0x1]  ;;  %v135_v1 = vld [vmem:[%s294_s0 + $0x1] sm:$0x1] }
  0x1d   :  { %s44_s21 = sld [smem:[#allocation5]]  ;;  %s137_s24 = sld [smem:[#allocation5 + $0x1]]  ;;  %v60_v2 = vld [vmem:[%s294_s0] sm:$0x1]  ;;  %v139_v5 = vld [vmem:[%s294_s0 + $0x1] sm:$0x1] }
  0x1e   :  { %s136_s23 = sld [smem:[#allocation2 + $0x80]]  ;;  %s138_s25 = sld [smem:[#allocation2 + $0x81]]  ;;  %v79_v9 = vld [vmem:[%s294_s0] sm:$0x1]  ;;  %v143_v14 = vld [vmem:[%s294_s0 + $0x1] sm:$0x1] }
  0x1f   :  { %s140_s28 = sld [smem:[#allocation2 + $0x100]]  ;;  %s258_s4 = sld [smem:[#allocation5 + $0x2]]  ;;  %v98_v18 = vld [vmem:[%s294_s0] sm:$0x1]  ;;  %v147_v23 = vld [vmem:[%s294_s0 + $0x1] sm:$0x1] }
  0x20   :  { %s142_s5 = sld [smem:[#allocation2 + $0x101]]  ;;  %s144_s8 = sld [smem:[#allocation2 + $0x180]] }
  0x21   :  { %s263_s9 = sld [smem:[#allocation5 + $0x3]]  ;;  %s146_s12 = sld [smem:[#allocation2 + $0x181]] }
  0x22   :  { %v42_v3 = vstv %s40_s2  ;;  %v50_v7 = vstv %s134_s22  ;;  %s223_s0 = smov [#allocation7]  }
  0x23   :  { %v45_v4 = vstv %s44_s21  ;;  %v43_v6 = vmul.f32 %v42_v3, %v41_v0  ;;  %v51_v10 = vmul.f32 %v135_v1, %v50_v7  ;;  %v64_v12 = vstv %s137_s24  ;;  %s121_s1 = sshll.u32 %s223_s0, 4  ;;  %s122_s1 = int_to_ptr.vmem [resolvable:$true] %s121_s1 }
  0x24   :  { %v61_v8 = vstv %s136_s23  ;;  %v68_v13 = vstv %s138_s25  ;;  %s193_s2 = scalar_lea.vmem %s122_s1, 64  ;;  %p198_p11 = scmp.lt.s32.totalorder %s122_s1, %s122_s1 }
  0x25   :  { %v62_v11 = vmul.f32 %v61_v8, %v60_v2  ;;  %v46_v15 = vadd.f32 %v45_v4, %v43_v6  ;;  %v69_v16 = vmul.f32 %v139_v5, %v68_v13  ;;  %v80_v17 = vstv %s140_s28  ;;  %p194_p10 = scmp.ne.s32.totalorder %s122_s1, %s193_s2  ;;  %p199_p12 = scmp.lt.s32.totalorder %s193_s2, %s193_s2 }
  0x26   :  { %v81_v20 = vmul.f32 %v80_v17, %v79_v9  ;;  %v83_v21 = vstv %s258_s4  ;;  %v87_v22 = vstv %s142_s5  ;;  %v99_v26 = vstv %s144_s8 }
  0x27   :  { %v65_v19 = vadd.f32 %v64_v12, %v62_v11  ;;  %v52_v24 = vadd.f32 %v51_v10, %v46_v15  ;;  %v88_v25 = vmul.f32 %v143_v14, %v87_v22  ;;  %v102_v27 = vstv %s263_s9  ;;  %p200_p13 = por %p199_p12, %p198_p11 }
  0x28   :  { %v84_v29 = vadd.f32 %v83_v21, %v81_v20  ;;  %v100_v30 = vmul.f32 %v99_v26, %v98_v18  ;;  %v106_v31 = vstv %s146_s12 }
  0x29   :  { %v70_v28 = vadd.f32 %v69_v16, %v65_v19  ;;  %v53_v32 = vsub.f32 0.0, %v52_v24  ;;  %v107_v33 = vmul.f32 %v147_v23, %v106_v31  ;;  %p201_p0 = pnand %p200_p13, %p194_p10 }
  0x2a   :  { %v89_v35 = vadd.f32 %v88_v25, %v84_v29  ;;  %v103_v36 = vadd.f32 %v102_v27, %v100_v30 }
  0x2b   :  { %v71_v34 = vsub.f32 0.0, %v70_v28  ;;  %v54_v37 = vmul.f32 1.442695, %v53_v32 }
  0x2c   :  { %v90_v39 = vsub.f32 0.0, %v89_v35  ;;  %v108_v40 = vadd.f32 %v107_v33, %v103_v36 }
  0x2d   :  { %v72_v38 = vmul.f32 1.442695, %v71_v34  ;;  %153 = vpow2.f32 %v54_v37 }
  0x2e   :  { %v91_v41 = vmul.f32 1.442695, %v90_v39  ;;  %v109_v42 = vsub.f32 0.0, %v108_v40 }
  0x2f   :  { %155 = vpow2.f32 %v72_v38 }
  0x30   :  { %157 = vpow2.f32 %v91_v41  ;;  %v110_v43 = vmul.f32 1.442695, %v109_v42 }
  0x32   :  { %159 = vpow2.f32 %v110_v43 }
  0x37   :  { %v154_v44 = vpop.eup %153 }
  0x38   :  { %v56_v46 = vadd.f32 1.0, %v154_v44 }
  0x39   :  { %v156_v45 = vpop.eup %155 }
  0x3a   :  { %v74_v47 = vadd.f32 1.0, %v156_v45  ;;  %v158_v48 = vpop.eup %157  ;;  %161 = vrcp.f32 %v56_v46 }
  0x3b   :  { %v93_v49 = vadd.f32 1.0, %v158_v48 }
  0x3c   :  { %163 = vrcp.f32 %v74_v47  ;;  %v160_v50 = vpop.eup %159 }
  0x3d   :  { %165 = vrcp.f32 %v93_v49  ;;  %v112_v51 = vadd.f32 1.0, %v160_v50 }
  0x3f   :  { %167 = vrcp.f32 %v112_v51 }
  0x44   :  { %v162_v52 = vpop.eup %161 }
  0x45   :  { %58 = vst [vmem:[#allocation7] sm:$0x1] %v162_v52 }
  0x46   :  { %v164_v53 = vpop.eup %163 }
  0x47   :  { %77 = vst [vmem:[#allocation7 + $0x1] sm:$0x1] %v164_v53  ;;  %v166_v54 = vpop.eup %165 }
  0x48   :  { %96 = vst [vmem:[#allocation7 + $0x2] sm:$0x1] %v166_v54 }
  0x49   :  { %v168_v55 = vpop.eup %167 }
  0x4a   :  { %115 = vst [vmem:[#allocation7 + $0x3] sm:$0x1] %v168_v55 }
  0x4b   :  { %204 = shalt.err (!%p201_p0)
}
  0x4c   :  { %s205_s23 = scalar_lea.hbm %s297_s3, 64 }
  0x4d   :  { %p206_p1 = scmp.ne.s32.totalorder %s297_s3, %s205_s23  ;;  %p209_p2 = scmp.lt.u32.totalorder %s205_s23, %s297_s3 }
  0x4f   :  { %p211_p3 = pnand %p209_p2, %p206_p1 }
  0x51   :  { %214 = shalt.err (!%p211_p3)
}
  0x52   :  { %s224_s28 = smov 16   ;;  %s225_s29 = smov 1  }
  0x53   :  { %127 = dma.vmem_to_hbm [thread:$0]  %s122_s1, 64, %s297_s3, [#allocation3], %s224_s28, %s224_s28, %s225_s29  }
  0x54   :  { %219 = dma.done.wait [#allocation3], 64  }
  0x55   :  { %220 = vsyncadd [#allocation3], 4294967232 }
  0x56   :  { %131 = vsyncpa [#allocation3], 1 }
  0x57   :  { %132 = vsyncpa [#allocation4], 1 }
  0x58   :  { %133 = vsyncpa [#allocation6], 1 }

</bundles_post_ra>
